<compile_context>
chip_gen: v5e
topology: v5e:2x2
jax: 0.10.0
libtpu: 0.0.40
codegen_flags: <defaults>
</compile_context>

<pallas_src>
import numpy as np
import jax
import jax.numpy as jnp
from jax.experimental import pallas as pl
from jax.experimental.pallas import tpu as pltpu


def _cdiv(a, b):
    return -(-a // b)


def make_kernel_np(k):
    """numpy equivalent of the PyTorch make_kernel: outer product of 1-D taps, normalized."""
    k = np.asarray(k, dtype=np.float64)
    if k.ndim == 1:
        k = np.outer(k, k)
    return k / k.sum()


# ---------------- Pallas kernel bodies (taps baked as Python constants) ----------------

def _make_separable_body(kx, ky):
    """Separable 2-pass FIR.  kx/ky are Python float lists (already flipped + normalized).

    x_ref: (BG, Hp, Win)   packed input block, Win = G*Wp + KW-1
    o_ref: (BG, Hc, Wout)  Wout = G*Wp (lane-dense), Hc = Hp-KH+1
    """
    kw, kh = len(kx), len(ky)

    def body(x_ref, o_ref):
        _, hc, wout = o_ref.shape
        x = x_ref[...].astype(jnp.float32)          # single load + cast

        # horizontal pass (KW taps) with two independent partial sums
        hpart = [None, None]
        for j in range(kw):
            t = kx[j] * x[:, :, j:j + wout]
            s = j & 1
            hpart[s] = t if hpart[s] is None else hpart[s] + t
        h = hpart[0] if hpart[1] is None else hpart[0] + hpart[1]

        # vertical pass (KH taps) with two independent partial sums
        vpart = [None, None]
        for i in range(kh):
            t = ky[i] * h[:, i:i + hc, :]
            s = i & 1
            vpart[s] = t if vpart[s] is None else vpart[s] + t
        v = vpart[0] if vpart[1] is None else vpart[0] + vpart[1]

        o_ref[...] = v.astype(o_ref.dtype)

    return body


def _make_dense_body(k2d):
    """Non-separable fallback (user passed a 2-D kernel); taps already flipped + normalized."""
    kh, kw = len(k2d), len(k2d[0])

    def body(x_ref, o_ref):
        _, hc, wout = o_ref.shape
        x = x_ref[...].astype(jnp.float32)
        acc = [None, None]
        idx = 0
        for i in range(kh):
            for j in range(kw):
                t = k2d[i][j] * x[:, i:i + hc, j:j + wout]
                s = idx & 1
                acc[s] = t if acc[s] is None else acc[s] + t
                idx += 1
        v = acc[0] if acc[1] is None else acc[0] + acc[1]
        o_ref[...] = v.astype(o_ref.dtype)

    return body


# ---------------- upfirdn2d wrapper ----------------

def upfirdn2d(x, kernel_np, sep=None, up=(1, 1), down=(1, 1), pad=(0, 0, 0, 0)):
    """JAX/Pallas equivalent of torch.ops.upfirdn.upfirdn2d as wrapped by compute_up.

    kernel_np : (KH, KW) numpy array, normalized and *already flipped* (the in-kernel
                loop is a correlation, so flipping reproduces true convolution).
    sep       : optional (ky_1d, kx_1d) numpy taps with outer(ky, kx) == kernel_np;
                enables the separable 2-pass FIR.
    """
    up_x, up_y = up
    down_x, down_y = down
    pad_x0, pad_x1, pad_y0, pad_y1 = pad

    n, c, in_h, in_w = x.shape
    kh, kw = kernel_np.shape

    out_h = (in_h * up_y + pad_y0 + pad_y1 - kh + down_y) // down_y
    out_w = (in_w * up_x + pad_x0 + pad_x1 - kw + down_x) // down_x

    # ---------------- glue (plain JAX): upsample / pad / crop ----------------
    p = n * c
    xf = x.reshape(p, in_h, in_w)
    if up_y > 1 or up_x > 1:
        # TODO(synk): polyphase decomposition for up>1 (avoid materializing the
        # zero-stuffed array: 4x HBM traffic + 4x wasted MACs for up=(2,2)).
        z = jnp.zeros((p, in_h, up_y, in_w, up_x), x.dtype)
        z = z.at[:, :, 0, :, 0].set(xf)
        xf = z.reshape(p, in_h * up_y, in_w * up_x)
    xf = jnp.pad(
        xf,
        ((0, 0),
         (max(pad_y0, 0), max(pad_y1, 0)),
         (max(pad_x0, 0), max(pad_x1, 0))))
    xf = xf[:,
            max(-pad_y0, 0): xf.shape[1] - max(-pad_y1, 0),
            max(-pad_x0, 0): xf.shape[2] - max(-pad_x1, 0)]

    hp_, wp_ = xf.shape[1], xf.shape[2]
    hc, wc = hp_ - kh + 1, wp_ - kw + 1            # valid FIR output before downsample

    # ---------------- lane-dense packing + block sizing ----------------
    # Pack G planes side-by-side along the last (lane) axis so the output block width
    # becomes G*Wp (>= ~128 lanes -> unmasked vector stores) instead of wc (<128).
    lane_target = 512
    g = max(1, min(p, _cdiv(lane_target, wp_)))
    ng = _cdiv(p, g)

    win = g * wp_ + (kw - 1)                       # packed input width (+ trailing zeros)
    wout = g * wp_                                 # packed (lane-dense) output width

    # Batch BG plane-groups per grid step: target ~1 MiB per input block so per-step
    # pipeline overhead (~0.35 us) is amortized, while double-buffered in+out blocks
    # plus in-register temporaries stay well inside every chip's VMEM budget
    # (v5e default raised to 32 MiB below; v7x has 64 MiB physical).
    group_bytes = (hp_ * win + hc * wout) * 4
    bg = max(1, min(ng, (1 << 20) // max(group_bytes, 1)))
    ng_pad = _cdiv(ng, bg) * bg
    p_pad = ng_pad * g
    # NOTE(v7x): with "parallel" grid semantics an even grid keeps both TensorCores busy.

    if p_pad > p:
        xf = jnp.concatenate(
            [xf, jnp.zeros((p_pad - p, hp_, wp_), xf.dtype)], axis=0)

    # (P, Hp, Wp) -> (NG, Hp, G*Wp) with KW-1 trailing zero columns; the KW-1 seam
    # columns between packed planes are computed but discarded after unpacking.
    xp = (xf.reshape(ng_pad, g, hp_, wp_)
             .transpose(0, 2, 1, 3)
             .reshape(ng_pad, hp_, g * wp_))
    if kw > 1:
        xp = jnp.pad(xp, ((0, 0), (0, 0), (0, kw - 1)))

    if sep is not None:
        body = _make_separable_body([float(v) for v in sep[1]],
                                    [float(v) for v in sep[0]])
    else:
        body = _make_dense_body([[float(v) for v in row] for row in kernel_np])

    conv = pl.pallas_call(
        body,
        out_shape=jax.ShapeDtypeStruct((ng_pad, hc, wout), x.dtype),
        grid_spec=pltpu.PrefetchScalarGridSpec(
            num_scalar_prefetch=0,
            grid=(ng_pad // bg,),
            in_specs=[pl.BlockSpec((bg, hp_, win), lambda b: (b, 0, 0))],
            out_specs=pl.BlockSpec((bg, hc, wout), lambda b: (b, 0, 0)),
        ),
        compiler_params=pltpu.CompilerParams(
            dimension_semantics=("parallel",),
            vmem_limit_bytes=32 * 1024 * 1024,
        ),
    )(xp)
    # TODO(synk): for very large planes (>~2k x 2k) add an H-tiling grid axis with a
    # KH-1-row halo instead of whole-plane blocks (needed to double-buffer on v7x).

    # ---------------- unpack + downsample / final crop ----------------
    out = (conv.reshape(ng_pad, hc, g, wp_)
               .transpose(0, 2, 1, 3)
               .reshape(p_pad, hc, wp_))
    out = out[:p, :, :wc]
    # TODO(synk): fuse the stride-`down` subsampling into the kernel for down>1
    # (default down=(1,1) makes this a no-op).
    out = out[:, ::down_y, ::down_x]
    out = out[:, :out_h, :out_w]
    return out.reshape(n, c, out_h, out_w)


def up_model_forward(x, kernel=(1, 3, 3, 1), up=(1, 1), down=(1, 1), pad=(0, 0, 0, 0)):
    """UpModel.forward: build the normalized (separable) kernel and run upfirdn2d."""
    k = np.asarray(kernel, dtype=np.float64)
    if k.ndim == 1:
        norm = float(np.outer(k, k).sum())          # == (sum k)^2
        k2d = np.outer(k, k) / norm
        k1f = k[::-1].copy()
        sep = (k1f, k1f / norm)                     # (ky, kx): outer(ky,kx) == flip(k2d)
    else:
        k2d = k / k.sum()
        sep = None
    k2d_flip = np.ascontiguousarray(k2d[::-1, ::-1])
    return upfirdn2d(x, k2d_flip, sep=sep, up=up, down=down, pad=pad)


if __name__ == "__main__":
    key = jax.random.PRNGKey(0)
    x = jax.random.normal(key, (2, 4, 16, 16), dtype=jnp.float32)

    fwd = jax.jit(up_model_forward)
    out = jax.block_until_ready(fwd(x))

    assert out.shape == (2, 4, 13, 13), out.shape

    # Independent reference: depthwise VALID conv with the flipped, normalized kernel.
    k2d = make_kernel_np((1, 3, 3, 1))
    wgt = jnp.asarray(np.tile(np.ascontiguousarray(k2d[::-1, ::-1])[None, None],
                              (x.shape[1], 1, 1, 1)), dtype=jnp.float32)
    ref = jax.lax.conv_general_dilated(
        x, wgt, window_strides=(1, 1), padding="VALID",
        feature_group_count=x.shape[1],
        dimension_numbers=("NCHW", "OIHW", "NCHW"))

    err = float(jnp.max(jnp.abs(out - ref)))
    assert err < 1e-5, err
    print("KERNEL_OK")
</pallas_src>

<mosaic_0001>
module attributes {stable_mosaic.version = 11 : i64} {
  func.func @body(%arg0: i32, %arg1: memref<1x16x131xf32, #tpu.memory_space<vmem>>, %arg2: memref<1x13x128xf32, #tpu.memory_space<vmem>>) attributes {dimension_semantics = [#tpu.dimension_semantics<parallel>], iteration_bounds = array<i64: 1>, scalar_prefetch = 0 : i64, scratch_operands = 0 : i64, tpu.core_type = #tpu.core_type<tc>, window_params = [{transform_indices = @transform_0, window_bounds = array<i64: 1, 16, 131>}, {transform_indices = @transform_1, window_bounds = array<i64: 1, 13, 128>}]} {
    %c0 = arith.constant 0 : index
    %c0_0 = arith.constant 0 : index
    %c0_1 = arith.constant 0 : index
    %0 = vector.load %arg1[%c0, %c0_0, %c0_1] : memref<1x16x131xf32, #tpu.memory_space<vmem>>, vector<1x16x131xf32>
    %1 = vector.extract_strided_slice %0 {offsets = [0, 0, 0], sizes = [1, 16, 128], strides = [1, 1, 1]} : vector<1x16x131xf32> to vector<1x16x128xf32>
    %cst = arith.constant 1.562500e-02 : f32
    %2 = vector.broadcast %cst : f32 to vector<1x16x128xf32>
    %3 = arith.mulf %2, %1 : vector<1x16x128xf32>
    %4 = vector.extract_strided_slice %0 {offsets = [0, 0, 1], sizes = [1, 16, 128], strides = [1, 1, 1]} : vector<1x16x131xf32> to vector<1x16x128xf32>
    %cst_2 = arith.constant 4.687500e-02 : f32
    %5 = vector.broadcast %cst_2 : f32 to vector<1x16x128xf32>
    %6 = arith.mulf %5, %4 : vector<1x16x128xf32>
    %7 = vector.extract_strided_slice %0 {offsets = [0, 0, 2], sizes = [1, 16, 128], strides = [1, 1, 1]} : vector<1x16x131xf32> to vector<1x16x128xf32>
    %cst_3 = arith.constant 4.687500e-02 : f32
    %8 = vector.broadcast %cst_3 : f32 to vector<1x16x128xf32>
    %9 = arith.mulf %8, %7 : vector<1x16x128xf32>
    %10 = arith.addf %3, %9 : vector<1x16x128xf32>
    %11 = vector.extract_strided_slice %0 {offsets = [0, 0, 3], sizes = [1, 16, 128], strides = [1, 1, 1]} : vector<1x16x131xf32> to vector<1x16x128xf32>
    %cst_4 = arith.constant 1.562500e-02 : f32
    %12 = vector.broadcast %cst_4 : f32 to vector<1x16x128xf32>
    %13 = arith.mulf %12, %11 : vector<1x16x128xf32>
    %14 = arith.addf %6, %13 : vector<1x16x128xf32>
    %15 = arith.addf %10, %14 : vector<1x16x128xf32>
    %16 = vector.extract_strided_slice %15 {offsets = [0, 0, 0], sizes = [1, 13, 128], strides = [1, 1, 1]} : vector<1x16x128xf32> to vector<1x13x128xf32>
    %cst_5 = arith.constant 1.000000e+00 : f32
    %17 = vector.broadcast %cst_5 : f32 to vector<1x13x128xf32>
    %18 = arith.mulf %17, %16 : vector<1x13x128xf32>
    %19 = vector.extract_strided_slice %15 {offsets = [0, 1, 0], sizes = [1, 13, 128], strides = [1, 1, 1]} : vector<1x16x128xf32> to vector<1x13x128xf32>
    %cst_6 = arith.constant 3.000000e+00 : f32
    %20 = vector.broadcast %cst_6 : f32 to vector<1x13x128xf32>
    %21 = arith.mulf %20, %19 : vector<1x13x128xf32>
    %22 = vector.extract_strided_slice %15 {offsets = [0, 2, 0], sizes = [1, 13, 128], strides = [1, 1, 1]} : vector<1x16x128xf32> to vector<1x13x128xf32>
    %cst_7 = arith.constant 3.000000e+00 : f32
    %23 = vector.broadcast %cst_7 : f32 to vector<1x13x128xf32>
    %24 = arith.mulf %23, %22 : vector<1x13x128xf32>
    %25 = arith.addf %18, %24 : vector<1x13x128xf32>
    %26 = vector.extract_strided_slice %15 {offsets = [0, 3, 0], sizes = [1, 13, 128], strides = [1, 1, 1]} : vector<1x16x128xf32> to vector<1x13x128xf32>
    %cst_8 = arith.constant 1.000000e+00 : f32
    %27 = vector.broadcast %cst_8 : f32 to vector<1x13x128xf32>
    %28 = arith.mulf %27, %26 : vector<1x13x128xf32>
    %29 = arith.addf %21, %28 : vector<1x13x128xf32>
    %30 = arith.addf %25, %29 : vector<1x13x128xf32>
    %c0_9 = arith.constant 0 : index
    %c0_10 = arith.constant 0 : index
    %c0_11 = arith.constant 0 : index
    %31 = vector.load %arg2[%c0_9, %c0_10, %c0_11] : memref<1x13x128xf32, #tpu.memory_space<vmem>>, vector<1x13x128xf32>
    tpu.vector_store %arg2[%c0_9, %c0_10, %c0_11], %30 {strides = array<i32>} : memref<1x13x128xf32, #tpu.memory_space<vmem>>, vector<1x13x128xf32>,
    return
  }
  func.func @transform_0(%arg0: i32) -> (i32, i32, i32) {
    %c0_i32 = arith.constant 0 : i32
    %c0_i32_0 = arith.constant 0 : i32
    %c0_i32_1 = arith.constant 0 : i32
    return %arg0, %c0_i32, %c0_i32_0 : i32, i32, i32
  }
  func.func @transform_1(%arg0: i32) -> (i32, i32, i32) {
    %c0_i32 = arith.constant 0 : i32
    %c0_i32_0 = arith.constant 0 : i32
    %c0_i32_1 = arith.constant 0 : i32
    return %arg0, %c0_i32, %c0_i32_0 : i32, i32, i32
  }
}

</mosaic_0001>

<bundles_post_ra>
// kernel: up_model_forward.1
= control target key start
LH: loop header
LB: loop body
LE: loop exit
PB: predicated region body
PF: predicated region fallthrough
CT: control target
= control target key end

     0   :  { %s119_s10 = smov 126   ;;  %vm30_vm0 = vcmask 1031168   ;;  %vm73_vm1 = vcmask 1039360   ;;  %vm84_vm2 = vcmask 1045504   ;;  %vm103_vm3 = vcmask 1046528   ;;  %s153_s0 = inlined_call_operand.vmem [shape: f32[1,16,131], index: 0, kind: input, shape index: {}]   ;;  %s154_s1 = inlined_call_operand.vmem [shape: f32[1,13,128], index: 1, kind: output, shape index: {}]  }
   0x1   :  { %v10_v0 = vld [vmem:[%s153_s0 + $0x10] sm:$0xff]  ;;  %v8_v1 = vld [vmem:[%s153_s0] sm:$0xff]  ;;  %v11_v5 = vld [vmem:[%s153_s0 + $0x18] sm:$0xff] }
   0x2   :  { %v13_v2 = vmul.f32 0.015625, %v10_v0  ;;  %v12_v3 = vmul.f32 0.015625, %v8_v1  ;;  %v14_v4 = vmul.f32 0.046875, %v8_v1  ;;  %v9_v6 = vld [vmem:[%s153_s0 + $0x8] sm:$0xff]  ;;  %v38_v7 = vmul.f32 0.015625, %v11_v5  ;;  %s120_s0 = smov 127  }
   0x3   :  { %v37_v8 = vmul.f32 0.015625, %v9_v6  ;;  %v16_v9 = vmul.f32 0.046875, %v10_v0  ;;  %v17_v10 = vmul.f32 0.046875, %v11_v5  ;;  %v15_v11 = vmul.f32 0.046875, %v9_v6 }
   0x4   :  { %47 = vrot.lane.b32.xlu1 %v13_v2, %s119_s10  ;;  %43 = vrot.lane.b32.xlu0 %v12_v3, %s119_s10 }
   0x5   :  { %22 = vrot.lane.b32.xlu2 %v14_v4, %s119_s10 }
   0xc   :  { %49 = vrot.lane.b32.xlu1 %v38_v7, %s119_s10  ;;  %45 = vrot.lane.b32.xlu0 %v37_v8, %s119_s10 }
   0xd   :  { %24 = vrot.lane.b32.xlu2 %v15_v11, %s119_s10 }
  0x14   :  { %26 = vrot.lane.b32.xlu0 %v16_v9, %s119_s10  ;;  %28 = vrot.lane.b32.xlu1 %v17_v10, %s119_s10 }
  0x5f   :  { %v23_v22 = vpop.permute.xlu2 %22 }
  0x67   :  { %v25_v23 = vpop.permute.xlu2 %24 }
  0x68   :  { %v31_v27 = vsel %vm30_vm0, %v23_v22, %v25_v23 }
  0x69   :  { %v35_v29 = vadd.f32 %v31_v27, %v12_v3 }
  0x76   :  { %v48_v12 = vpop.permute.xlu1 %47  ;;  %v44_v13 = vpop.permute.xlu0 %43 }
  0x7e   :  { %v50_v14 = vpop.permute.xlu1 %49  ;;  %v46_v15 = vpop.permute.xlu0 %45 }
  0x7f   :  { %v52_v16 = vsel %vm30_vm0, %v48_v12, %v50_v14  ;;  %v51_v17 = vsel %vm30_vm0, %v44_v13, %v46_v15  ;;  %v58_v18 = vadd.f32 %v46_v15, %v15_v11  ;;  %v60_v21 = vadd.f32 %v50_v14, %v17_v10 }
  0x80   :  { %v59_v19 = vadd.f32 %v52_v16, %v16_v9  ;;  %v57_v20 = vadd.f32 %v51_v17, %v14_v4 }
  0x81   :  { %67 = vrot.lane.b32.xlu0 %v58_v18, %s120_s0 }
  0x82   :  { %69 = vrot.lane.b32.xlu1 %v59_v19, %s120_s0  ;;  %65 = vrot.lane.b32.xlu2 %v57_v20, %s120_s0 }
  0x86   :  { %v27_v24 = vpop.permute.xlu0 %26  ;;  %v29_v26 = vpop.permute.xlu1 %28 }
  0x87   :  { %v32_v28 = vsel %vm30_vm0, %v27_v24, %v29_v26 }
  0x88   :  { %v36_v32 = vadd.f32 %v32_v28, %v13_v2 }
  0x8a   :  { %71 = vrot.lane.b32.xlu2 %v60_v21, %s120_s0 }
  0xdc   :  { %v66_v25 = vpop.permute.xlu2 %65 }
  0xe4   :  { %v72_v31 = vpop.permute.xlu2 %71 }
  0xf3   :  { %v68_v30 = vpop.permute.xlu0 %67 }
  0xf4   :  { %v74_v33 = vsel %vm73_vm1, %v66_v25, %v68_v30  ;;  %v70_v34 = vpop.permute.xlu1 %69 }
  0xf5   :  { %v78_v35 = vadd.f32 %v74_v33, %v35_v29  ;;  %v75_v36 = vsel %vm73_vm1, %v70_v34, %v72_v31 }
  0xf6   :  { %v79_v37 = vadd.f32 %v75_v36, %v36_v32 }
  0xf7   :  { %v80_v38 = vmul.f32 3.0, %v78_v35  ;;  %v94_v39 = vrot.slane %v78_v35, 2 }
  0xf8   :  { %v81_v40 = vmul.f32 3.0, %v79_v37  ;;  %v95_v41 = vrot.slane %v79_v37, 2 }
  0xf9   :  { %v85_v42 = vrot.slane %v80_v38, 2 }
  0xfa   :  { %v86_v43 = vrot.slane %v81_v40, 2  ;;  %v96_v44 = vsel %vm84_vm2, %v94_v39, %v95_v41  ;;  %v100_v45 = vadd.f32 %v95_v41, %v81_v40 }
  0xfb   :  { %v99_v46 = vadd.f32 %v96_v44, %v80_v38 }
  0xfc   :  { %v87_v47 = vsel %vm84_vm2, %v85_v42, %v86_v43  ;;  %v91_v48 = vadd.f32 %v86_v43, %v79_v37  ;;  %v105_v49 = vrot.slane %v100_v45, 1 }
  0xfd   :  { %v90_v50 = vadd.f32 %v87_v47, %v78_v35  ;;  %v104_v51 = vrot.slane %v99_v46, 1 }
  0xfe   :  { %v110_v52 = vadd.f32 %v105_v49, %v91_v48 }
  0xff   :  { %v106_v53 = vsel %vm103_vm3, %v104_v51, %v105_v49 }
 0x100   :  { %v109_v54 = vadd.f32 %v106_v53, %v90_v50  ;;  %112 = vst [vmem:[%s154_s1 + $0x8] sm:$0x1f] %v110_v52 }
 0x102   :  { %111 = vst [vmem:[%s154_s1] sm:$0xff] %v109_v54 }

</bundles_post_ra>
